<compile_context>
chip_gen: v7x
topology: tpu7x:2x2x1
jax: 0.10.0
libtpu: 0.0.40
codegen_flags: <defaults>
</compile_context>

<pallas_src>
import numpy as np
import jax
import jax.numpy as jnp
from jax.experimental import pallas as pl
from jax.experimental.pallas import tpu as pltpu

# MXU input dtype (bf16 doubles MXU rate on v6e/v7x and halves weight traffic).
# Accumulation, biases, gate math and h/c state remain float32.
COMPUTE_DTYPE = jnp.bfloat16


# ----------------------- generic tiled matmul + bias --------------------------
def _matmul_bias_kernel(a_ref, b_ref, bias_ref, o_ref, acc_ref):
    @pl.when(pl.program_id(2) == 0)
    def _():
        acc_ref[...] = jnp.zeros_like(acc_ref)

    acc_ref[...] += jnp.dot(a_ref[...], b_ref[...],
                            preferred_element_type=jnp.float32)

    @pl.when(pl.program_id(2) == pl.num_programs(2) - 1)
    def _():
        o_ref[...] = (acc_ref[...] + bias_ref[...]).astype(o_ref.dtype)


def _tile(dim, target):
    # Toy shapes either fit in one block or divide the target evenly; otherwise
    # fall back to one full block (always layout-legal).
    if dim <= target or dim % target == 0:
        return min(dim, target)
    return dim


def matmul_bias(a, b, bias, *, tm=128, tn=256, tk=256, out_dtype=jnp.float32):
    """out = a @ b + bias, tiled (M,N parallel; K reduction with f32 acc scratch)."""
    M, K = a.shape
    K2, N = b.shape
    assert K == K2, (K, K2)
    tm, tn, tk = _tile(M, tm), _tile(N, tn), _tile(K, tk)
    a = a.astype(COMPUTE_DTYPE)
    b = b.astype(COMPUTE_DTYPE)
    bias = bias.reshape(1, N).astype(jnp.float32)
    # NOTE: at production scale (V=49408, img_dim=150528) raise tile sizes and
    # set pltpu.CompilerParams(vmem_limit_bytes=...) with headroom for the
    # double-buffered pipeline (64 MiB physical VMEM on v7x, 128 on v5e/v6e).
    return pl.pallas_call(
        _matmul_bias_kernel,
        out_shape=jax.ShapeDtypeStruct((M, N), out_dtype),
        grid=(M // tm, N // tn, K // tk),
        in_specs=[
            pl.BlockSpec((tm, tk), lambda i, j, k: (i, k)),
            pl.BlockSpec((tk, tn), lambda i, j, k: (k, j)),
            pl.BlockSpec((1, tn), lambda i, j, k: (0, j)),
        ],
        out_specs=pl.BlockSpec((tm, tn), lambda i, j, k: (i, j)),
        scratch_shapes=[pltpu.VMEM((tm, tn), jnp.float32)],
        compiler_params=pltpu.CompilerParams(
            dimension_semantics=("parallel", "parallel", "arbitrary")),
    )(a, b, bias)


# ----------------------- LSTM recurrence kernel --------------------------------
# Per step only h @ W_hh remains; the input projection (incl. biases and the
# time-invariant feature term) arrives precomputed as gates_x[T, 4, B, Hd] (f32).
def _lstm_kernel(gx_ref, whh_ref, h_out_ref, h_sc, c_sc):
    t = pl.program_id(0)

    @pl.when(t == 0)
    def _():
        h_sc[...] = jnp.zeros_like(h_sc)
        c_sc[...] = jnp.zeros_like(c_sc)

    h = h_sc[...]                       # (B, Hd) f32
    c = c_sc[...]                       # (B, Hd) f32
    hc = h.astype(whh_ref.dtype)        # bf16 operand for the MXU

    def gate(g):                        # (B, Hd) f32
        return gx_ref[0, g] + jnp.dot(hc, whh_ref[g],
                                      preferred_element_type=jnp.float32)

    # PyTorch nn.LSTM gate ordering: i, f, g, o
    i_g = jax.nn.sigmoid(gate(0))
    f_g = jax.nn.sigmoid(gate(1))
    g_g = jnp.tanh(gate(2))
    o_g = jax.nn.sigmoid(gate(3))

    c_new = f_g * c + i_g * g_g
    h_new = o_g * jnp.tanh(c_new)
    c_sc[...] = c_new
    h_sc[...] = h_new
    h_out_ref[0] = h_new.astype(h_out_ref.dtype)


def lstm_recurrence(gates_x_t4bh, w_hh_g):
    T, G, B, Hd = gates_x_t4bh.shape
    assert G == 4
    return pl.pallas_call(
        _lstm_kernel,
        out_shape=jax.ShapeDtypeStruct((T, B, Hd), COMPUTE_DTYPE),
        grid=(T,),
        in_specs=[
            pl.BlockSpec((1, 4, B, Hd), lambda t: (t, 0, 0, 0)),
            pl.BlockSpec((4, Hd, Hd), lambda t: (0, 0, 0)),   # resident weights
        ],
        out_specs=pl.BlockSpec((1, B, Hd), lambda t: (t, 0, 0)),
        scratch_shapes=[pltpu.VMEM((B, Hd), jnp.float32),
                        pltpu.VMEM((B, Hd), jnp.float32)],
        # INVARIANT: the T axis must stay "arbitrary" (single core, in order)
        # because h_sc/c_sc carry the recurrence across grid steps.
        compiler_params=pltpu.CompilerParams(
            dimension_semantics=("arbitrary",)),
    )(gates_x_t4bh.astype(jnp.float32), w_hh_g.astype(COMPUTE_DTYPE))


# ----------------------- full forward pass -------------------------------------
def image_captioning_forward(params, images, captions):
    B, C, Hh, Ww = images.shape
    T = captions.shape[1]
    E = params["embedding"].shape[1]
    Hd = params["w_hh_t"].shape[0]
    V = params["w_fc_t"].shape[1]

    # "CLIP" features: tiled K-reduction matmul over the flattened image.
    img_flat = images.reshape(B, C * Hh * Ww).astype(jnp.float32)
    features = matmul_bias(img_flat, params["w_enc"], params["b_enc"],
                           tm=128, tn=256, tk=256)                 # (B, Hd)

    # Hoisted input projection:  x @ W_ih = emb @ W_ih[:E] + features @ W_ih[E:]
    w_ih_emb = params["w_ih_t"][:E]                                # (E, 4Hd)
    w_ih_feat = params["w_ih_t"][E:]                               # (Hd, 4Hd)

    emb = jnp.take(params["embedding"], captions, axis=0)          # (B, T, E) gather (plain JAX)
    gates_emb = matmul_bias(emb.reshape(B * T, E), w_ih_emb,
                            jnp.zeros((1, 4 * Hd), jnp.float32))   # (B*T, 4Hd)
    gates_feat = matmul_bias(features, w_ih_feat,
                             params["b_gates"])                    # (B, 4Hd), time-invariant

    gates_x = gates_emb.reshape(B, T, 4 * Hd) + gates_feat[:, None, :]
    # Time-major, gate-separated layout (T, 4, B, Hd): each gate is a clean
    # (B, Hd) tile in the recurrent kernel (no intra-vreg lane slicing).
    gates_x = gates_x.reshape(B, T, 4, Hd).transpose(1, 2, 0, 3)   # (T, 4, B, Hd)

    w_hh_g = params["w_hh_t"].reshape(Hd, 4, Hd).transpose(1, 0, 2)  # (4, Hd, Hd)
    h_all = lstm_recurrence(gates_x, w_hh_g)                       # (T, B, Hd) bf16

    # Batched output FC over all timesteps, vocab axis tiled ("parallel").
    logits = matmul_bias(h_all.reshape(T * B, Hd), params["w_fc_t"],
                         params["b_fc"], tm=128, tn=128, tk=256)   # (T*B, V)
    return logits.reshape(T, B, V).transpose(1, 0, 2)              # (B, T, V)


# ----------------------- pure-JAX f32 reference ---------------------------------
def reference_forward(params, images, captions):
    B, C, Hh, Ww = images.shape
    T = captions.shape[1]
    Hd = params["w_hh_t"].shape[0]
    img_flat = images.reshape(B, C * Hh * Ww).astype(jnp.float32)
    features = (jnp.dot(img_flat, params["w_enc"],
                        precision=jax.lax.Precision.HIGHEST) + params["b_enc"])
    emb = jnp.take(params["embedding"], captions, axis=0)
    feats_rep = jnp.broadcast_to(features[:, None, :], (B, T, Hd))
    lstm_in = jnp.concatenate([emb, feats_rep], axis=-1)
    x_tbd = jnp.transpose(lstm_in, (1, 0, 2))

    def step(carry, x_t):
        h, c = carry
        gates = (jnp.dot(x_t, params["w_ih_t"], precision=jax.lax.Precision.HIGHEST)
                 + jnp.dot(h, params["w_hh_t"], precision=jax.lax.Precision.HIGHEST)
                 + params["b_gates"])
        i_g = jax.nn.sigmoid(gates[:, 0 * Hd:1 * Hd])
        f_g = jax.nn.sigmoid(gates[:, 1 * Hd:2 * Hd])
        g_g = jnp.tanh(gates[:, 2 * Hd:3 * Hd])
        o_g = jax.nn.sigmoid(gates[:, 3 * Hd:4 * Hd])
        c_new = f_g * c + i_g * g_g
        h_new = o_g * jnp.tanh(c_new)
        return (h_new, c_new), h_new

    h0 = jnp.zeros((B, Hd), jnp.float32)
    c0 = jnp.zeros((B, Hd), jnp.float32)
    _, h_all = jax.lax.scan(step, (h0, c0), x_tbd)
    logits = (jnp.einsum("tbh,hv->tbv", h_all, params["w_fc_t"],
                         precision=jax.lax.Precision.HIGHEST) + params["b_fc"])
    return jnp.transpose(logits, (1, 0, 2))


# ----------------------- main ---------------------------------------------------
if __name__ == "__main__":
    B, C, HI, WI = 2, 3, 16, 16      # images (NCHW)
    T = 8                            # caption length
    EMB = 32                         # embed_dim  (512 in original)
    HID = 32                         # hidden_dim (512 in original)
    VOCAB = 256                      # vocab_size (49408 in original CLIP tokenizer)

    key = jax.random.PRNGKey(0)
    ks = jax.random.split(key, 10)
    img_dim = C * HI * WI
    din = EMB + HID

    params = {
        "w_enc":     0.02 * jax.random.normal(ks[0], (img_dim, HID), jnp.float32),
        "b_enc":     0.01 * jax.random.normal(ks[1], (1, HID), jnp.float32),
        "embedding": 0.02 * jax.random.normal(ks[2], (VOCAB, EMB), jnp.float32),
        # PyTorch W_ih is [4H, Din]; stored transposed for right-matmul.
        "w_ih_t":    0.05 * jax.random.normal(ks[3], (din, 4 * HID), jnp.float32),
        "w_hh_t":    0.05 * jax.random.normal(ks[4], (HID, 4 * HID), jnp.float32),
        # b_gates = b_ih + b_hh (semantically identical to summing two biases)
        "b_gates":   0.01 * jax.random.normal(ks[5], (1, 4 * HID), jnp.float32),
        "w_fc_t":    0.05 * jax.random.normal(ks[6], (HID, VOCAB), jnp.float32),
        "b_fc":      0.01 * jax.random.normal(ks[7], (1, VOCAB), jnp.float32),
    }

    images = jax.random.normal(ks[8], (B, C, HI, WI), jnp.float32)
    captions = jax.random.randint(ks[9], (B, T), 0, VOCAB, dtype=jnp.int32)

    out = image_captioning_forward(params, images, captions)
    out = jax.block_until_ready(out)
    assert out.shape == (B, T, VOCAB), out.shape

    ref = jax.block_until_ready(reference_forward(params, images, captions))
    # Tolerance reflects bf16 MXU-input policy vs the f32 HIGHEST reference.
    np.testing.assert_allclose(np.asarray(out), np.asarray(ref),
                               rtol=2e-2, atol=2e-2)
    print("KERNEL_OK")
</pallas_src>

<mosaic_0001>
module attributes {stable_mosaic.version = 11 : i64} {
  func.func @_matmul_bias_kernel(%arg0: i32, %arg1: i32, %arg2: i32, %arg3: memref<2x256xbf16, #tpu.memory_space<vmem>>, %arg4: memref<256x32xbf16, #tpu.memory_space<vmem>>, %arg5: memref<1x32xf32, #tpu.memory_space<vmem>>, %arg6: memref<2x32xf32, #tpu.memory_space<vmem>>, %arg7: memref<2x32xf32, #tpu.memory_space<vmem>>) attributes {dimension_semantics = [#tpu.dimension_semantics<parallel>, #tpu.dimension_semantics<parallel>, #tpu.dimension_semantics<arbitrary>], iteration_bounds = array<i64: 1, 1, 3>, scalar_prefetch = 0 : i64, scratch_operands = 1 : i64, tpu.core_type = #tpu.core_type<tc>, window_params = [{transform_indices = @transform_0, window_bounds = array<i64: 2, 256>}, {transform_indices = @transform_1, window_bounds = array<i64: 256, 32>}, {transform_indices = @transform_2, window_bounds = array<i64: 1, 32>}, {transform_indices = @transform_3, window_bounds = array<i64: 2, 32>}]} {
    %c0_i32 = arith.constant 0 : i32
    %0 = arith.cmpi eq, %arg2, %c0_i32 : i32
    %1 = arith.extui %0 : i1 to i32
    %c0_i32_0 = arith.constant 0 : i32
    %2 = arith.cmpi ne, %1, %c0_i32_0 : i32
    scf.if %2 {
      %cst_9 = arith.constant 0.000000e+00 : f32
      %12 = vector.broadcast %cst_9 : f32 to vector<2x32xf32>
      %c0_10 = arith.constant 0 : index
      %c0_11 = arith.constant 0 : index
      %13 = vector.load %arg7[%c0_10, %c0_11] : memref<2x32xf32, #tpu.memory_space<vmem>>, vector<2x32xf32>
      tpu.vector_store %arg7[%c0_10, %c0_11], %12 {strides = array<i32>} : memref<2x32xf32, #tpu.memory_space<vmem>>, vector<2x32xf32>,
    } else {
    }
    %c0 = arith.constant 0 : index
    %c0_1 = arith.constant 0 : index
    %3 = vector.load %arg7[%c0, %c0_1] : memref<2x32xf32, #tpu.memory_space<vmem>>, vector<2x32xf32>
    %c0_2 = arith.constant 0 : index
    %c0_3 = arith.constant 0 : index
    %4 = vector.load %arg3[%c0_2, %c0_3] : memref<2x256xbf16, #tpu.memory_space<vmem>>, vector<2x256xbf16>
    %c0_4 = arith.constant 0 : index
    %c0_5 = arith.constant 0 : index
    %5 = vector.load %arg4[%c0_4, %c0_5] : memref<256x32xbf16, #tpu.memory_space<vmem>>, vector<256x32xbf16>
    %cst = arith.constant dense<0.000000e+00> : vector<2x32xf32>
    %6 = tpu.matmul %4, %5, %cst {dimension_numbers = #tpu.dot_dimension_numbers<[1], [0], [0], [1], [0, 0, 1, 1], [], []>} : vector<2x256xbf16>, vector<256x32xbf16>, vector<2x32xf32> -> vector<2x32xf32>
    %7 = arith.addf %3, %6 : vector<2x32xf32>
    %c0_6 = arith.constant 0 : index
    %c0_7 = arith.constant 0 : index
    %8 = vector.load %arg7[%c0_6, %c0_7] : memref<2x32xf32, #tpu.memory_space<vmem>>, vector<2x32xf32>
    tpu.vector_store %arg7[%c0_6, %c0_7], %7 {strides = array<i32>} : memref<2x32xf32, #tpu.memory_space<vmem>>, vector<2x32xf32>,
    %c2_i32 = arith.constant 2 : i32
    %9 = arith.cmpi eq, %arg2, %c2_i32 : i32
    %10 = arith.extui %9 : i1 to i32
    %c0_i32_8 = arith.constant 0 : i32
    %11 = arith.cmpi ne, %10, %c0_i32_8 : i32
    scf.if %11 {
      %c0_9 = arith.constant 0 : index
      %c0_10 = arith.constant 0 : index
      %12 = vector.load %arg7[%c0_9, %c0_10] : memref<2x32xf32, #tpu.memory_space<vmem>>, vector<2x32xf32>
      %c0_11 = arith.constant 0 : index
      %c0_12 = arith.constant 0 : index
      %13 = vector.load %arg5[%c0_11, %c0_12] : memref<1x32xf32, #tpu.memory_space<vmem>>, vector<1x32xf32>
      %14 = vector.broadcast %13 : vector<1x32xf32> to vector<2x32xf32>
      %15 = arith.addf %12, %14 : vector<2x32xf32>
      %c0_13 = arith.constant 0 : index
      %c0_14 = arith.constant 0 : index
      %16 = vector.load %arg6[%c0_13, %c0_14] : memref<2x32xf32, #tpu.memory_space<vmem>>, vector<2x32xf32>
      tpu.vector_store %arg6[%c0_13, %c0_14], %15 {strides = array<i32>} : memref<2x32xf32, #tpu.memory_space<vmem>>, vector<2x32xf32>,
    } else {
    }
    return
  }
  func.func @transform_0(%arg0: i32, %arg1: i32, %arg2: i32) -> (i32, i32) {
    %c0_i32 = arith.constant 0 : i32
    return %arg0, %arg2 : i32, i32
  }
  func.func @transform_1(%arg0: i32, %arg1: i32, %arg2: i32) -> (i32, i32) {
    %c0_i32 = arith.constant 0 : i32
    return %arg2, %arg1 : i32, i32
  }
  func.func @transform_2(%arg0: i32, %arg1: i32, %arg2: i32) -> (i32, i32) {
    %c0_i32 = arith.constant 0 : i32
    %c0_i32_0 = arith.constant 0 : i32
    return %c0_i32, %arg1 : i32, i32
  }
  func.func @transform_3(%arg0: i32, %arg1: i32, %arg2: i32) -> (i32, i32) {
    %c0_i32 = arith.constant 0 : i32
    return %arg0, %arg1 : i32, i32
  }
}

</mosaic_0001>

<bundles_post_ra>
// kernel: tpu_custom_call.1
= control target key start
LH: loop header
LB: loop body
LE: loop exit
PB: predicated region body
PF: predicated region fallthrough
CT: control target
= control target key end

     0   :  { %8 = vsyncpa [#allocation4], 0  ;;  %s736_s12 = smov 0   ;;  %s738_s13 = smov 0   ;;  %s828_s0 = inlined_call_operand.vmem [shape: bf16[2,768], index: 0, kind: input, shape index: {}]   ;;  %s829_s1 = inlined_call_operand.vmem [shape: bf16[768,32], index: 1, kind: input, shape index: {}]   ;;  %s830_s2 = inlined_call_operand.vmem [shape: f32[1,32], index: 2, kind: input, shape index: {}]   ;;  %s831_s3 = inlined_call_operand.hbm [shape: f32[2,32], index: 3, kind: output, shape index: {}]  }
   0x1   :  { %s740_s14 = smov 0  }
   0x2 LB: > { %s556_s15 = sadd.s32 4294967295, %s711_s14   ;;  %s26_s16 = sadd.s32 1, %s707_s13  ;;  %s711_s14 = sphi %s740_s14, %s14_s14   ;;  %s707_s13 = sphi %s738_s13, %s834_s13   ;;  %s703_s12 = sphi %s736_s12, %s833_s12  }
   0x3   : > { %p27_p0 = scmp.ge.s32.totalorder %s26_s16, 3  ;;  %p560_p1 = scmp.ge.s32.totalorder %s711_s14, 1 }
   0x4   : > { %p189_p2 = scmp.lt.s32.totalorder %s711_s14, 4 }
   0x5   : > { %s836_s16 = smov (%p27_p0, %s26_s16), 0 }
   0x6   : > { %p190_p3 = pnand %p560_p1, %p189_p2 }
   0x7   : > { %s561_s17 = sshll.u32 (!%p190_p3), %s703_s12, 1  ;;  %s562_s18 = sshll.u32 (!%p190_p3), %s703_s12, 5 }
   0x8   : > { %193 = sbr.rel (%p190_p3) target bundleno = 310 (0x136), region = 32  ;;  %p225_p4 = scmp.lt.s32.totalorder (!%p190_p3), %s561_s17, 5 }
   0x9   : > { %p232_p5 = scmp.lt.s32.totalorder (!%p190_p3), %s562_s18, 95  ;;  %p564_p6 = scmp.ne.s32.totalorder (!%p190_p3), %s703_s12, 0 }
   0xf   : > { %s838_s17 = smov (!%p225_p4, %s561_s17), 5  ;;  %s840_s18 = smov (!%p232_p5, %s562_s18), 95 }
  0x10   : > { %s229_s21 = scalar_lea.vmem %s828_s0, %s838_s17  ;;  %s563_s22 = sshll.u32 %s840_s18, 2  ;;  %vm248_vm0 = vcmask (!%p564_p6), 254976   ;;  %v713_v0 = vmov (!%p564_p6), 0.0  }
  0x11   : > { %s768_s25 = scalar_lea.vmem %s829_s1, %s563_s22  ;;  %247 = sbr.rel (%p564_p6) target bundleno = 24 (0x18), region = 36  ;;  %249 = vst.msk [vmem:[#allocation2] sm:$0x3] (!%p564_p6), %vm248_vm0, %v713_v0 }
  0x18 PF: > { %v643_v1 = vld [vmem:[%s768_s25 + $0x40] sm:$0xff]   ;;  %v645_v3 = vld [vmem:[%s768_s25 + $0x48] sm:$0xff]   ;;  %v647_v5 = vld [vmem:[%s768_s25 + $0x50] sm:$0xff]   ;;  %v296_v10 = vlaneseq  ;;  %v714_v14 = vmov 1966171168   ;;  %vm446_vm1 = vcmask 254976  }
  0x19   : > { %v644_v2 = vld [vmem:[%s768_s25] sm:$0xff]   ;;  %588 = vmatprep.subr.bf16.mxu0 %v643_v1  ;;  %v646_v4 = vld [vmem:[%s768_s25 + $0x8] sm:$0xff]   ;;  %v648_v6 = vld [vmem:[%s768_s25 + $0x10] sm:$0xff]   ;;  %v294_v15 = vunpack.c.l.s4 %v714_v14  ;;  %p582_p7 = scmp.ne.s32.totalorder %s703_s12, 2 }
  0x1a   : > { %589 = vmatpush3.bf16.msra.mxu0 %v644_v2  ;;  %v649_v7 = vld [vmem:[%s768_s25 + $0x58] sm:$0xff]   ;;  %v651_v9 = vld [vmem:[%s768_s25 + $0x60] sm:$0xff]   ;;  %v653_v12 = vld [vmem:[%s768_s25 + $0x68] sm:$0xff]   ;;  %v297_v16 = vshrl.u32 %v296_v10, 7 }
  0x1b   : > { %590 = vmatprep.subr.bf16.mxu0 %v645_v3  ;;  %v650_v8 = vld [vmem:[%s768_s25 + $0x18] sm:$0xff]   ;;  %v652_v11 = vld [vmem:[%s768_s25 + $0x20] sm:$0xff]   ;;  %v654_v17 = vld [vmem:[%s768_s25 + $0x28] sm:$0xff]   ;;  %v295_v19 = vunpack.c.0.s8 %v294_v15 }
  0x1c   : > { %v565_v13 = vld.sshfl [vmem:[%s229_s21] sm:$0x11 pattern:$0x75316420]  ;;  %v655_v20 = vld [vmem:[%s768_s25 + $0x70] sm:$0xff]   ;;  %v657_v24 = vld [vmem:[%s768_s25 + $0x78] sm:$0xff]  }
  0x1d   : > { %v292_v18 = vcombine.high %v565_v13, %v565_v13  ;;  %v298_v21 = vsub.s32 %v295_v19, %v297_v16  ;;  %v656_v22 = vld [vmem:[%s768_s25 + $0x30] sm:$0xff]   ;;  %v658_v25 = vld [vmem:[%s768_s25 + $0x38] sm:$0xff]   ;;  %v250_v28 = vld [vmem:[#allocation2] sm:$0x3] }
  0x1e   : > { %591 = vmatpush3.bf16.msra.mxu0 %v646_v4  ;;  %v583_v35 = vld [vmem:[%s830_s2] ss:$0 sm:$0xff] (!%p582_p7) }
  0x1f   : > { %592 = vmatprep.subr.bf16.mxu0 %v647_v5  ;;  %v306_v23 = vrot.slane %v292_v18, %v298_v21  ;;  %v299_v26 = vrot.slane %v565_v13, %v298_v21 }
  0x21   : > { %437 = vmatprep.mubr.bf16.mxu0 %v306_v23 }
  0x22   : > { %593 = vmatpush3.bf16.msra.mxu0 %v648_v6 }
  0x23   : > { %594 = vmatprep.subr.bf16.mxu0 %v649_v7 }
  0x26   : > { %595 = vmatpush3.bf16.msra.mxu0 %v650_v8 }
  0x27   : > { %596 = vmatprep.subr.bf16.mxu0 %v651_v9 }
  0x2a   : > { %597 = vmatpush3.bf16.msra.mxu0 %v652_v11 }
  0x2b   : > { %598 = vmatprep.subr.bf16.mxu0 %v653_v12 }
  0x2e   : > { %599 = vmatpush3.bf16.msra.mxu0 %v654_v17 }
  0x2f   : > { %600 = vmatprep.subr.bf16.mxu0 %v655_v20 }
  0x32   : > { %601 = vmatpush3.bf16.msra.mxu0 %v656_v22 }
  0x33   : > { %602 = vmatprep.subr.bf16.mxu0 %v657_v24 }
  0x36   : > { %603 = vmatpush3.bf16.msra.mxu0 %v658_v25 }
  0x39   : > { %438 = vmatmul.mubr.bf16.vlgmr.msra.gmra.mrb[0].mxu0 %v299_v26 }
 0x10c   : > { %v604_v27 = vpop.f32.mrb[0].mxu0  ;;  %451 = sbr.rel (%p582_p7) target bundleno = 285 (0x11d), region = 40 }
 0x10d   : > { %v605_v29 = vpop.f32.mrb[1].mxu0 }
 0x10e   : > { %v606_v30 = vadd.f32 %v605_v29, %v604_v27  ;;  %v607_v31 = vpop.f32.mrb[2].mxu0 }
 0x10f   : > { %v608_v32 = vpop.f32.mrb[3].mxu0 }
 0x110   : > { %v445_v33 = vadd.f32 %v606_v30, %v250_v28 }
 0x112   : > { %447 = vst.msk [vmem:[#allocation2] sm:$0x3] %vm446_vm1, %v445_v33 }
 0x119   : > { %v452_v34 = vld [vmem:[#allocation2] sm:$0x3] }
 0x11a   : > { %v460_v36 = vadd.f32 %v583_v35, %v452_v34 }
 0x11c   : > { %461 = vst.msk [vmem:[#allocation3] sm:$0x3] %vm446_vm1, %v460_v36 }
 0x11d PF: > { %p793_p8 = scmp.eq.s32.totalorder %s556_s15, 2  ;;  %s715_s29 = smov [#allocation3]  }
 0x11e   : > { %s472_s30 = sshll.u32 %s715_s29, 4  ;;  %s473_s30 = int_to_ptr.vmem [resolvable:$true] %s472_s30 }
 0x11f   : > { %s659_s4 = scalar_lea.vmem %s473_s30, 32  ;;  %p666_p12 = scmp.lt.s32.totalorder %s473_s30, %s473_s30 }
 0x120   : > { %p660_p9 = scmp.ne.s32.totalorder %s473_s30, %s659_s4  ;;  %p667_p13 = scmp.lt.s32.totalorder %s659_s4, %s659_s4 }
 0x122   : > { %p661_p10 = pnand %p660_p9, %p793_p8  ;;  %p668_p0 = por %p667_p13, %p666_p12 }
 0x124   : > { %p662_p11 = pneg %p661_p10 }
 0x126   : > { %p669_p1 = pnand %p668_p0, %p662_p11 }
 0x128   : > { %672 = shalt.err (!%p669_p1)
}
 0x129   : > { %s673_s7 = scalar_lea.hbm %s831_s3, 32 }
 0x12a   : > { %p674_p2 = scmp.ne.s32.totalorder %s831_s3, %s673_s7  ;;  %p679_p5 = scmp.lt.u32.totalorder %s673_s7, %s831_s3 }
 0x12c   : > { %p675_p3 = pnand %p674_p2, %p793_p8 }
 0x12e   : > { %p676_p4 = pneg %p675_p3 }
 0x130   : > { %p681_p6 = pnand %p679_p5, %p676_p4 }
 0x132   : > { %684 = shalt.err (!%p681_p6)
}
 0x133   : > { %611 = dma.vmem_to_hbm [thread:$0]  (%p793_p8), %s473_s30, 32, %s831_s3, [#allocation4]  }
 0x134   : > { %698 = dma.done.wait (%p793_p8), [#allocation4], 32  }
 0x135   : > { %700 = vsyncadd (%p793_p8), [#allocation4], 4294967264 }
 0x136 PF: > { %s14_s14 = sadd.s32 1, %s711_s14   ;;  %s833_s12 = smov %s707_s13 }
 0x137   : > { %p11_p7 = scmp.ge.s32.totalorder %s14_s14, 5   ;;  %s834_s13 = smov %s836_s16 }
 0x139   :  { %13 = sbr.rel (!%p11_p7) target bundleno = 2 (0x2), region = 74 }
 0x140   :  { %485 = vsyncpa [#allocation4], 1 }
 0x141   :  { %487 = vsyncpa [#allocation4 + $0x1], 1 }

</bundles_post_ra>
